<compile_context>
chip_gen: v7x
topology: tpu7x:2x2x1
jax: 0.10.0
libtpu: 0.0.40
codegen_flags: <defaults>
</compile_context>

<pallas_src>
import math
from functools import partial

import jax
import jax.numpy as jnp
import numpy as np
from jax import lax
from jax.experimental import pallas as pl
from jax.experimental.pallas import tpu as pltpu


# ----------------------------------------------------------------------------
# Helpers
# ----------------------------------------------------------------------------
def _rotate_half(x):
    d = x.shape[-1] // 2
    return jnp.concatenate([-x[..., d:], x[..., :d]], axis=-1)


def _rope_block(x, cos, sin_left, sin_right, head_dim):
    """Blockwise rotate-half RoPE on a (rows, heads_in_tile * head_dim) slab.

    rotate_half per head is expressed with two full-width lane shifts (static
    slice + concat) and pre-masked/signed sin tables.  This avoids any
    in-kernel reshape to (rows, heads, head_dim).  Wrap-around elements from
    the full-width shifts are multiplied by zeroed sin entries, so they never
    contribute.
    """
    h = head_dim // 2
    left = jnp.concatenate([x[:, h:], x[:, :h]], axis=-1)     # x[., j + h]
    right = jnp.concatenate([x[:, -h:], x[:, :-h]], axis=-1)  # x[., j - h]
    return x * cos + left * sin_left + right * sin_right


def _pick_tile(n, preferred):
    """Largest divisor of n that is <= preferred, preferring 128- then
    8-aligned values; falls back to the full dimension (always legal)."""
    t = min(n, preferred)
    if t == n:
        return n
    for align in (128, 8):
        cand = (t // align) * align
        while cand >= align:
            if n % cand == 0:
                return cand
            cand -= align
    # TODO(synk): pad + mask ragged tails instead of falling back to full dim.
    return n


def _pick_n_tile(c, d, preferred):
    """Output-dim tile: divides c, multiple of head_dim d and of 128 lanes."""
    t = min(c, preferred)
    if t == c:
        return c
    step = (d * 128) // math.gcd(d, 128)
    cand = (t // step) * step
    while cand >= step:
        if c % cand == 0:
            return cand
        cand -= step
    return c


def _default_vmem_limit():
    """Generation-aware scoped-VMEM limit (~48 MiB on v7x, ~96 MiB on v5e/v6e)."""
    cap = 128 * 1024 * 1024
    try:
        info = pltpu.get_tpu_info()
        cap = int(getattr(info, "vmem_capacity_bytes", cap))
    except Exception:
        pass
    return int(min(cap * 3 // 4, 100 * 1024 * 1024))


# ----------------------------------------------------------------------------
# Stage 1: fused QKV projection + RoPE (applied once, in the finalize).
# ----------------------------------------------------------------------------
def _qkv_proj_rope_kernel(x_ref, wq_ref, wk_ref, wv_ref,
                          cos_ref, sinl_ref, sinr_ref,
                          q_ref, k_ref, v_ref,
                          acc_q, acc_k, acc_v,
                          *, head_dim, sm_scale):
    kk = pl.program_id(2)

    @pl.when(kk == 0)
    def _init():
        zeros = jnp.zeros(acc_q.shape, acc_q.dtype)
        acc_q[...] = zeros
        acc_k[...] = zeros
        acc_v[...] = zeros

    xb = x_ref[...].astype(jnp.bfloat16)          # f32 HBM read, cast in-kernel
    acc_q[...] += jnp.dot(xb, wq_ref[...], preferred_element_type=jnp.float32)
    acc_k[...] += jnp.dot(xb, wk_ref[...], preferred_element_type=jnp.float32)
    acc_v[...] += jnp.dot(xb, wv_ref[...], preferred_element_type=jnp.float32)

    @pl.when(kk == pl.num_programs(2) - 1)
    def _finalize():
        cos = cos_ref[...]
        sinl = sinl_ref[...]
        sinr = sinr_ref[...]
        q = _rope_block(acc_q[...], cos, sinl, sinr, head_dim) * sm_scale
        k = _rope_block(acc_k[...], cos, sinl, sinr, head_dim)
        q_ref[...] = q.astype(q_ref.dtype)
        k_ref[...] = k.astype(k_ref.dtype)
        v_ref[...] = acc_v[...].astype(v_ref.dtype)


# ----------------------------------------------------------------------------
# Stage 2: flash attention (pre-rotated, pre-scaled Q/K), online softmax.
# ----------------------------------------------------------------------------
def _flash_attn_kernel(q_ref, k_ref, v_ref, o_ref, m_scr, l_scr, acc_scr):
    qi = pl.program_id(2)
    ki = pl.program_id(3)
    n_kv = pl.num_programs(3)
    tq = q_ref.shape[2]
    tkv = k_ref.shape[2]
    q_start = qi * tq
    kv_start = ki * tkv

    @pl.when(ki == 0)
    def _init():
        m_scr[...] = jnp.full(m_scr.shape, -jnp.inf, dtype=m_scr.dtype)
        l_scr[...] = jnp.zeros(l_scr.shape, l_scr.dtype)
        acc_scr[...] = jnp.zeros(acc_scr.shape, acc_scr.dtype)

    def _scores():
        return jnp.einsum("hqd,hkd->hqk", q_ref[0], k_ref[0],
                          preferred_element_type=jnp.float32)

    def _update(s):
        m_prev = m_scr[...]
        m_new = jnp.maximum(m_prev, jnp.max(s, axis=-1, keepdims=True))
        alpha = jnp.exp(m_prev - m_new)
        p = jnp.exp(s - m_new)
        l_scr[...] = alpha * l_scr[...] + jnp.sum(p, axis=-1, keepdims=True)
        acc_scr[...] = alpha * acc_scr[...] + jnp.einsum(
            "hqk,hkd->hqd", p.astype(v_ref.dtype), v_ref[0],
            preferred_element_type=jnp.float32)
        m_scr[...] = m_new

    # Fully-valid tiles strictly below the diagonal: no mask work at all.
    @pl.when(kv_start + tkv <= q_start)
    def _full():
        _update(_scores())

    # Diagonal-crossing tiles: apply the causal mask.
    @pl.when(jnp.logical_and(kv_start + tkv > q_start, kv_start < q_start + tq))
    def _diag():
        s = _scores()
        row = q_start + lax.broadcasted_iota(jnp.int32, (tq, tkv), 0)
        col = kv_start + lax.broadcasted_iota(jnp.int32, (tq, tkv), 1)
        _update(jnp.where((row >= col)[None], s, -1e30))

    # Tiles entirely above the diagonal: no compute (and no DMA, because the
    # kv block index is clamped in the index_map).

    @pl.when(ki == n_kv - 1)
    def _finalize():
        inv_l = pl.reciprocal(l_scr[...], approx=True)
        o_ref[0] = (acc_scr[...] * inv_l).astype(o_ref.dtype)


# ----------------------------------------------------------------------------
# Stage 3: output projection (y @ Wc^T), rows/N/K tiled.
# ----------------------------------------------------------------------------
def _out_proj_kernel(y_ref, wc_ref, o_ref, acc):
    kk = pl.program_id(2)

    @pl.when(kk == 0)
    def _init():
        acc[...] = jnp.zeros(acc.shape, acc.dtype)

    acc[...] += jnp.dot(y_ref[...], wc_ref[...],
                        preferred_element_type=jnp.float32)

    @pl.when(kk == pl.num_programs(2) - 1)
    def _finalize():
        o_ref[...] = acc[...].astype(o_ref.dtype)


# ----------------------------------------------------------------------------
# Wrapper
# ----------------------------------------------------------------------------
def causal_self_attention(x, wq, wkv, wc, cos, sin, *, n_head,
                          row_tile=512, n_tile=1024, k_tile=512,
                          q_tile=256, kv_tile=256, head_group=8,
                          vmem_limit_bytes=None):
    """x: (B, T, C) f32.  wq: (C, C), wkv: (2C, C), wc: (C, C) as in nn.Linear.
    cos/sin: (T, D) RoPE caches.  Training path of the PyTorch module."""
    B, T, C = x.shape
    H = n_head
    assert C % H == 0
    D = C // H
    BT = B * T
    sm_scale = 1.0 / math.sqrt(D)

    if vmem_limit_bytes is None:
        vmem_limit_bytes = _default_vmem_limit()

    # Tiles.  TR divides T (row tiles never cross a batch boundary, so the
    # RoPE position block is simply r % (T // TR)).
    TR = _pick_tile(T, row_tile)
    TN = _pick_n_tile(C, D, n_tile)
    TKC = _pick_tile(C, k_tile)
    TQ = _pick_tile(T, q_tile)
    TKV = _pick_tile(T, kv_tile)
    HG = max(1, math.gcd(H, max(1, head_group)))
    rows_per_seq = T // TR

    # nn.Linear weights (out, in) -> transposed bf16 operands for x @ W^T.
    # NOTE: in real use these would be stored pre-transposed/pre-cast once,
    # not converted per forward call.
    wq_t = wq.T.astype(jnp.bfloat16)        # (C, C)
    wk_t = wkv[:C].T.astype(jnp.bfloat16)   # (C, C)  kv_proj -> K half
    wv_t = wkv[C:].T.astype(jnp.bfloat16)   # (C, C)  kv_proj -> V half
    wc_t = wc.T.astype(jnp.bfloat16)        # (C, C)

    # Pre-signed / masked sin tables for the reshape-free blockwise RoPE, tiled
    # across the heads contained in one TN output tile.
    cos = cos.astype(jnp.float32)
    sin = sin.astype(jnp.float32)
    first_half = (jnp.arange(D) < (D // 2))[None, :]
    sin_left = jnp.where(first_half, -sin, 0.0)    # -sin on the first half
    sin_right = jnp.where(first_half, 0.0, sin)    # +sin on the second half
    reps = TN // D
    cos_blk = jnp.tile(cos, (1, reps))             # (T, TN)
    sinl_blk = jnp.tile(sin_left, (1, reps))
    sinr_blk = jnp.tile(sin_right, (1, reps))

    x2d = x.reshape(BT, C)                          # f32; cast happens in-kernel

    cparams3 = pltpu.CompilerParams(
        dimension_semantics=("parallel", "parallel", "arbitrary"),
        vmem_limit_bytes=vmem_limit_bytes)
    cparams4 = pltpu.CompilerParams(
        dimension_semantics=("parallel", "parallel", "parallel", "arbitrary"),
        vmem_limit_bytes=vmem_limit_bytes)

    # --- Stage 1: fused QKV projection + RoPE (+ q pre-scaling). ---
    rope_spec = pl.BlockSpec((TR, TN), lambda r, n, kk: (r % rows_per_seq, 0))
    q, k, v = pl.pallas_call(
        partial(_qkv_proj_rope_kernel, head_dim=D, sm_scale=sm_scale),
        out_shape=(jax.ShapeDtypeStruct((BT, C), jnp.bfloat16),) * 3,
        grid_spec=pltpu.PrefetchScalarGridSpec(
            num_scalar_prefetch=0,
            grid=(BT // TR, C // TN, C // TKC),
            in_specs=[
                pl.BlockSpec((TR, TKC), lambda r, n, kk: (r, kk)),
                pl.BlockSpec((TKC, TN), lambda r, n, kk: (kk, n)),
                pl.BlockSpec((TKC, TN), lambda r, n, kk: (kk, n)),
                pl.BlockSpec((TKC, TN), lambda r, n, kk: (kk, n)),
                rope_spec, rope_spec, rope_spec,
            ],
            out_specs=[pl.BlockSpec((TR, TN), lambda r, n, kk: (r, n))] * 3,
            scratch_shapes=[pltpu.VMEM((TR, TN), jnp.float32)] * 3,
        ),
        compiler_params=cparams3,
    )(x2d, wq_t, wk_t, wv_t, cos_blk, sinl_blk, sinr_blk)

    # Layout plumbing (XLA): (B*T, C) -> (B, H, T, D).
    def to_heads(t2):
        return t2.reshape(B, T, H, D).transpose(0, 2, 1, 3)

    qh, kh, vh = to_heads(q), to_heads(k), to_heads(v)

    # --- Stage 2: flash attention. ---
    # Clamp the kv block index so fully-masked (upper-triangular) tiles repeat
    # the previous block index -> Pallas elides their DMA entirely.
    def kv_idx(b, h, qi, ki):
        return (b, h, jnp.minimum(ki, (qi * TQ + TQ - 1) // TKV), 0)

    attn = pl.pallas_call(
        _flash_attn_kernel,
        out_shape=jax.ShapeDtypeStruct((B, H, T, D), jnp.bfloat16),
        grid_spec=pltpu.PrefetchScalarGridSpec(
            num_scalar_prefetch=0,
            grid=(B, H // HG, T // TQ, T // TKV),
            in_specs=[
                pl.BlockSpec((1, HG, TQ, D), lambda b, h, qi, ki: (b, h, qi, 0)),
                pl.BlockSpec((1, HG, TKV, D), kv_idx),
                pl.BlockSpec((1, HG, TKV, D), kv_idx),
            ],
            out_specs=pl.BlockSpec((1, HG, TQ, D),
                                   lambda b, h, qi, ki: (b, h, qi, 0)),
            scratch_shapes=[
                pltpu.VMEM((HG, TQ, 1), jnp.float32),   # running max m
                pltpu.VMEM((HG, TQ, 1), jnp.float32),   # running sum l
                pltpu.VMEM((HG, TQ, D), jnp.float32),   # output accumulator
            ],
        ),
        compiler_params=cparams4,
    )(qh, kh, vh)

    # (B, H, T, D) -> (B*T, C)
    y2d = attn.transpose(0, 2, 1, 3).reshape(BT, C)

    # --- Stage 3: output projection. ---
    out = pl.pallas_call(
        _out_proj_kernel,
        out_shape=jax.ShapeDtypeStruct((BT, C), x.dtype),
        grid_spec=pltpu.PrefetchScalarGridSpec(
            num_scalar_prefetch=0,
            grid=(BT // TR, C // TN, C // TKC),
            in_specs=[
                pl.BlockSpec((TR, TKC), lambda r, n, kk: (r, kk)),
                pl.BlockSpec((TKC, TN), lambda r, n, kk: (kk, n)),
            ],
            out_specs=pl.BlockSpec((TR, TN), lambda r, n, kk: (r, n)),
            scratch_shapes=[pltpu.VMEM((TR, TN), jnp.float32)],
        ),
        compiler_params=cparams3,
    )(y2d, wc_t)

    return out.reshape(B, T, C)


# ----------------------------------------------------------------------------
# RoPE cache + pure-JAX reference (mirrors the PyTorch forward, is_test=False)
# ----------------------------------------------------------------------------
def rope_cos_sin(seq_len, dim, base=10000.0, dtype=jnp.float32):
    """Replicates LlamaRotaryEmbedding's cos/sin cache for positions [0, seq_len)."""
    inv_freq = 1.0 / (base ** (jnp.arange(0, dim, 2, dtype=jnp.float32) / dim))
    t = jnp.arange(seq_len, dtype=jnp.float32)
    freqs = jnp.einsum("i,j->ij", t, inv_freq)
    emb = jnp.concatenate([freqs, freqs], axis=-1)        # (T, dim)
    return jnp.cos(emb).astype(dtype), jnp.sin(emb).astype(dtype)


def reference(x, wq, wkv, wc, cos, sin, *, n_head):
    B, T, C = x.shape
    D = C // n_head
    q = x @ wq.T
    kv = x @ wkv.T
    k, v = kv[..., :C], kv[..., C:]

    def to_heads(t):
        return t.reshape(B, T, n_head, D).transpose(0, 2, 1, 3)

    q, k, v = to_heads(q), to_heads(k), to_heads(v)
    cosb, sinb = cos[None, None], sin[None, None]
    q = q * cosb + _rotate_half(q) * sinb
    k = k * cosb + _rotate_half(k) * sinb
    scores = jnp.einsum("bhqd,bhkd->bhqk", q, k) / math.sqrt(D)
    mask = jnp.tril(jnp.ones((T, T), dtype=bool))
    scores = jnp.where(mask, scores, -jnp.inf)
    p = jax.nn.softmax(scores, axis=-1)
    y = jnp.einsum("bhqk,bhkd->bhqd", p, v)
    y = y.transpose(0, 2, 1, 3).reshape(B, T, C)
    return y @ wc.T


if __name__ == "__main__":
    key = jax.random.PRNGKey(0)
    k1, k2 = jax.random.split(key)

    # --- Test 1: small shapes (single tile per axis), as per module config. ---
    B, T = 2, 8
    n_embd, n_head = 32, 4
    head_size = n_embd // n_head
    kx, kq, kkv, kc = jax.random.split(k1, 4)
    x = jax.random.normal(kx, (B, T, n_embd), dtype=jnp.float32)
    wq = 0.02 * jax.random.normal(kq, (n_embd, n_embd), dtype=jnp.float32)        # q_proj.weight
    wkv = 0.02 * jax.random.normal(kkv, (2 * n_embd, n_embd), dtype=jnp.float32)  # kv_proj.weight
    wc = 0.02 * jax.random.normal(kc, (n_embd, n_embd), dtype=jnp.float32)        # c_proj.weight
    cos, sin = rope_cos_sin(T, head_size)

    y = jax.block_until_ready(
        causal_self_attention(x, wq, wkv, wc, cos, sin, n_head=n_head))
    y_ref = reference(x, wq, wkv, wc, cos, sin, n_head=n_head)
    np.testing.assert_allclose(np.asarray(y), np.asarray(y_ref),
                               rtol=2e-2, atol=2e-3)

    # --- Test 2: multi-tile path (exercises K/N/row tiling, head groups,
    # multiple kv tiles with TQ != TKV, causal DMA clamp + diagonal masking,
    # online-softmax rescaling across kv tiles). ---
    B2, T2, C2, H2 = 2, 256, 256, 4
    D2 = C2 // H2
    kx2, kq2, kkv2, kc2 = jax.random.split(k2, 4)
    x2 = jax.random.normal(kx2, (B2, T2, C2), dtype=jnp.float32)
    wq2 = 0.02 * jax.random.normal(kq2, (C2, C2), dtype=jnp.float32)
    wkv2 = 0.02 * jax.random.normal(kkv2, (2 * C2, C2), dtype=jnp.float32)
    wc2 = 0.02 * jax.random.normal(kc2, (C2, C2), dtype=jnp.float32)
    cos2, sin2 = rope_cos_sin(T2, D2)

    y2 = jax.block_until_ready(causal_self_attention(
        x2, wq2, wkv2, wc2, cos2, sin2, n_head=H2,
        row_tile=64, n_tile=128, k_tile=128,
        q_tile=128, kv_tile=64, head_group=2))
    y2_ref = reference(x2, wq2, wkv2, wc2, cos2, sin2, n_head=H2)
    np.testing.assert_allclose(np.asarray(y2), np.asarray(y2_ref),
                               rtol=5e-2, atol=5e-3)

    print("KERNEL_OK")
</pallas_src>

<mosaic_0001>
module attributes {stable_mosaic.version = 11 : i64} {
  func.func @_qkv_proj_rope_kernel(%arg0: i32, %arg1: i32, %arg2: i32, %arg3: memref<8x32xf32, #tpu.memory_space<vmem>>, %arg4: memref<32x32xbf16, #tpu.memory_space<vmem>>, %arg5: memref<32x32xbf16, #tpu.memory_space<vmem>>, %arg6: memref<32x32xbf16, #tpu.memory_space<vmem>>, %arg7: memref<8x32xf32, #tpu.memory_space<vmem>>, %arg8: memref<8x32xf32, #tpu.memory_space<vmem>>, %arg9: memref<8x32xf32, #tpu.memory_space<vmem>>, %arg10: memref<8x32xbf16, #tpu.memory_space<vmem>>, %arg11: memref<8x32xbf16, #tpu.memory_space<vmem>>, %arg12: memref<8x32xbf16, #tpu.memory_space<vmem>>, %arg13: memref<8x32xf32, #tpu.memory_space<vmem>>, %arg14: memref<8x32xf32, #tpu.memory_space<vmem>>, %arg15: memref<8x32xf32, #tpu.memory_space<vmem>>) attributes {dimension_semantics = [#tpu.dimension_semantics<parallel>, #tpu.dimension_semantics<parallel>, #tpu.dimension_semantics<arbitrary>], iteration_bounds = array<i64: 2, 1, 1>, scalar_prefetch = 0 : i64, scratch_operands = 3 : i64, tpu.core_type = #tpu.core_type<tc>, window_params = [{transform_indices = @transform_0, window_bounds = array<i64: 8, 32>}, {transform_indices = @transform_1, window_bounds = array<i64: 32, 32>}, {transform_indices = @transform_2, window_bounds = array<i64: 32, 32>}, {transform_indices = @transform_3, window_bounds = array<i64: 32, 32>}, {transform_indices = @transform_4, window_bounds = array<i64: 8, 32>}, {transform_indices = @transform_5, window_bounds = array<i64: 8, 32>}, {transform_indices = @transform_6, window_bounds = array<i64: 8, 32>}, {transform_indices = @transform_7, window_bounds = array<i64: 8, 32>}, {transform_indices = @transform_8, window_bounds = array<i64: 8, 32>}, {transform_indices = @transform_9, window_bounds = array<i64: 8, 32>}]} {
    %c0_i32 = arith.constant 0 : i32
    %0 = arith.cmpi eq, %arg2, %c0_i32 : i32
    %1 = arith.extui %0 : i1 to i32
    %c0_i32_0 = arith.constant 0 : i32
    %2 = arith.cmpi ne, %1, %c0_i32_0 : i32
    scf.if %2 {
      %cst_24 = arith.constant 0.000000e+00 : f32
      %23 = vector.broadcast %cst_24 : f32 to vector<8x32xf32>
      %c0_25 = arith.constant 0 : index
      %c0_26 = arith.constant 0 : index
      %24 = vector.load %arg13[%c0_25, %c0_26] : memref<8x32xf32, #tpu.memory_space<vmem>>, vector<8x32xf32>
      tpu.vector_store %arg13[%c0_25, %c0_26], %23 {strides = array<i32>} : memref<8x32xf32, #tpu.memory_space<vmem>>, vector<8x32xf32>,
      %c0_27 = arith.constant 0 : index
      %c0_28 = arith.constant 0 : index
      %25 = vector.load %arg14[%c0_27, %c0_28] : memref<8x32xf32, #tpu.memory_space<vmem>>, vector<8x32xf32>
      tpu.vector_store %arg14[%c0_27, %c0_28], %23 {strides = array<i32>} : memref<8x32xf32, #tpu.memory_space<vmem>>, vector<8x32xf32>,
      %c0_29 = arith.constant 0 : index
      %c0_30 = arith.constant 0 : index
      %26 = vector.load %arg15[%c0_29, %c0_30] : memref<8x32xf32, #tpu.memory_space<vmem>>, vector<8x32xf32>
      tpu.vector_store %arg15[%c0_29, %c0_30], %23 {strides = array<i32>} : memref<8x32xf32, #tpu.memory_space<vmem>>, vector<8x32xf32>,
    } else {
    }
    %c0 = arith.constant 0 : index
    %c0_1 = arith.constant 0 : index
    %3 = vector.load %arg3[%c0, %c0_1] : memref<8x32xf32, #tpu.memory_space<vmem>>, vector<8x32xf32>
    %4 = arith.truncf %3 : vector<8x32xf32> to vector<8x32xbf16>
    %c0_2 = arith.constant 0 : index
    %c0_3 = arith.constant 0 : index
    %5 = vector.load %arg13[%c0_2, %c0_3] : memref<8x32xf32, #tpu.memory_space<vmem>>, vector<8x32xf32>
    %c0_4 = arith.constant 0 : index
    %c0_5 = arith.constant 0 : index
    %6 = vector.load %arg4[%c0_4, %c0_5] : memref<32x32xbf16, #tpu.memory_space<vmem>>, vector<32x32xbf16>
    %cst = arith.constant dense<0.000000e+00> : vector<8x32xf32>
    %7 = tpu.matmul %4, %6, %cst {dimension_numbers = #tpu.dot_dimension_numbers<[1], [0], [0], [1], [0, 0, 1, 1], [], []>} : vector<8x32xbf16>, vector<32x32xbf16>, vector<8x32xf32> -> vector<8x32xf32>
    %8 = arith.addf %5, %7 : vector<8x32xf32>
    %c0_6 = arith.constant 0 : index
    %c0_7 = arith.constant 0 : index
    %9 = vector.load %arg13[%c0_6, %c0_7] : memref<8x32xf32, #tpu.memory_space<vmem>>, vector<8x32xf32>
    tpu.vector_store %arg13[%c0_6, %c0_7], %8 {strides = array<i32>} : memref<8x32xf32, #tpu.memory_space<vmem>>, vector<8x32xf32>,
    %c0_8 = arith.constant 0 : index
    %c0_9 = arith.constant 0 : index
    %10 = vector.load %arg14[%c0_8, %c0_9] : memref<8x32xf32, #tpu.memory_space<vmem>>, vector<8x32xf32>
    %c0_10 = arith.constant 0 : index
    %c0_11 = arith.constant 0 : index
    %11 = vector.load %arg5[%c0_10, %c0_11] : memref<32x32xbf16, #tpu.memory_space<vmem>>, vector<32x32xbf16>
    %cst_12 = arith.constant dense<0.000000e+00> : vector<8x32xf32>
    %12 = tpu.matmul %4, %11, %cst_12 {dimension_numbers = #tpu.dot_dimension_numbers<[1], [0], [0], [1], [0, 0, 1, 1], [], []>} : vector<8x32xbf16>, vector<32x32xbf16>, vector<8x32xf32> -> vector<8x32xf32>
    %13 = arith.addf %10, %12 : vector<8x32xf32>
    %c0_13 = arith.constant 0 : index
    %c0_14 = arith.constant 0 : index
    %14 = vector.load %arg14[%c0_13, %c0_14] : memref<8x32xf32, #tpu.memory_space<vmem>>, vector<8x32xf32>
    tpu.vector_store %arg14[%c0_13, %c0_14], %13 {strides = array<i32>} : memref<8x32xf32, #tpu.memory_space<vmem>>, vector<8x32xf32>,
    %c0_15 = arith.constant 0 : index
    %c0_16 = arith.constant 0 : index
    %15 = vector.load %arg15[%c0_15, %c0_16] : memref<8x32xf32, #tpu.memory_space<vmem>>, vector<8x32xf32>
    %c0_17 = arith.constant 0 : index
    %c0_18 = arith.constant 0 : index
    %16 = vector.load %arg6[%c0_17, %c0_18] : memref<32x32xbf16, #tpu.memory_space<vmem>>, vector<32x32xbf16>
    %cst_19 = arith.constant dense<0.000000e+00> : vector<8x32xf32>
    %17 = tpu.matmul %4, %16, %cst_19 {dimension_numbers = #tpu.dot_dimension_numbers<[1], [0], [0], [1], [0, 0, 1, 1], [], []>} : vector<8x32xbf16>, vector<32x32xbf16>, vector<8x32xf32> -> vector<8x32xf32>
    %18 = arith.addf %15, %17 : vector<8x32xf32>
    %c0_20 = arith.constant 0 : index
    %c0_21 = arith.constant 0 : index
    %19 = vector.load %arg15[%c0_20, %c0_21] : memref<8x32xf32, #tpu.memory_space<vmem>>, vector<8x32xf32>
    tpu.vector_store %arg15[%c0_20, %c0_21], %18 {strides = array<i32>} : memref<8x32xf32, #tpu.memory_space<vmem>>, vector<8x32xf32>,
    %c0_i32_22 = arith.constant 0 : i32
    %20 = arith.cmpi eq, %arg2, %c0_i32_22 : i32
    %21 = arith.extui %20 : i1 to i32
    %c0_i32_23 = arith.constant 0 : i32
    %22 = arith.cmpi ne, %21, %c0_i32_23 : i32
    scf.if %22 {
      %c0_24 = arith.constant 0 : index
      %c0_25 = arith.constant 0 : index
      %23 = vector.load %arg7[%c0_24, %c0_25] : memref<8x32xf32, #tpu.memory_space<vmem>>, vector<8x32xf32>
      %c0_26 = arith.constant 0 : index
      %c0_27 = arith.constant 0 : index
      %24 = vector.load %arg8[%c0_26, %c0_27] : memref<8x32xf32, #tpu.memory_space<vmem>>, vector<8x32xf32>
      %c0_28 = arith.constant 0 : index
      %c0_29 = arith.constant 0 : index
      %25 = vector.load %arg9[%c0_28, %c0_29] : memref<8x32xf32, #tpu.memory_space<vmem>>, vector<8x32xf32>
      %c0_30 = arith.constant 0 : index
      %c0_31 = arith.constant 0 : index
      %26 = vector.load %arg13[%c0_30, %c0_31] : memref<8x32xf32, #tpu.memory_space<vmem>>, vector<8x32xf32>
      %27 = vector.extract_strided_slice %26 {offsets = [0, 4], sizes = [8, 28], strides = [1, 1]} : vector<8x32xf32> to vector<8x28xf32>
      %28 = vector.extract_strided_slice %26 {offsets = [0, 0], sizes = [8, 4], strides = [1, 1]} : vector<8x32xf32> to vector<8x4xf32>
      %29 = tpu.concatenate %27, %28 in 1 : vector<8x28xf32>, vector<8x4xf32> -> vector<8x32xf32>
      %30 = vector.extract_strided_slice %26 {offsets = [0, 28], sizes = [8, 4], strides = [1, 1]} : vector<8x32xf32> to vector<8x4xf32>
      %31 = vector.extract_strided_slice %26 {offsets = [0, 0], sizes = [8, 28], strides = [1, 1]} : vector<8x32xf32> to vector<8x28xf32>
      %32 = tpu.concatenate %30, %31 in 1 : vector<8x4xf32>, vector<8x28xf32> -> vector<8x32xf32>
      %33 = arith.mulf %26, %23 : vector<8x32xf32>
      %34 = arith.mulf %29, %24 : vector<8x32xf32>
      %35 = arith.addf %33, %34 : vector<8x32xf32>
      %36 = arith.mulf %32, %25 : vector<8x32xf32>
      %37 = arith.addf %35, %36 : vector<8x32xf32>
      %cst_32 = arith.constant 0.353553385 : f32
      %38 = vector.broadcast %cst_32 : f32 to vector<8x32xf32>
      %39 = arith.mulf %37, %38 : vector<8x32xf32>
      %c0_33 = arith.constant 0 : index
      %c0_34 = arith.constant 0 : index
      %40 = vector.load %arg14[%c0_33, %c0_34] : memref<8x32xf32, #tpu.memory_space<vmem>>, vector<8x32xf32>
      %41 = vector.extract_strided_slice %40 {offsets = [0, 4], sizes = [8, 28], strides = [1, 1]} : vector<8x32xf32> to vector<8x28xf32>
      %42 = vector.extract_strided_slice %40 {offsets = [0, 0], sizes = [8, 4], strides = [1, 1]} : vector<8x32xf32> to vector<8x4xf32>
      %43 = tpu.concatenate %41, %42 in 1 : vector<8x28xf32>, vector<8x4xf32> -> vector<8x32xf32>
      %44 = vector.extract_strided_slice %40 {offsets = [0, 28], sizes = [8, 4], strides = [1, 1]} : vector<8x32xf32> to vector<8x4xf32>
      %45 = vector.extract_strided_slice %40 {offsets = [0, 0], sizes = [8, 28], strides = [1, 1]} : vector<8x32xf32> to vector<8x28xf32>
      %46 = tpu.concatenate %44, %45 in 1 : vector<8x4xf32>, vector<8x28xf32> -> vector<8x32xf32>
      %47 = arith.mulf %40, %23 : vector<8x32xf32>
      %48 = arith.mulf %43, %24 : vector<8x32xf32>
      %49 = arith.addf %47, %48 : vector<8x32xf32>
      %50 = arith.mulf %46, %25 : vector<8x32xf32>
      %51 = arith.addf %49, %50 : vector<8x32xf32>
      %52 = arith.truncf %39 : vector<8x32xf32> to vector<8x32xbf16>
      %c0_35 = arith.constant 0 : index
      %c0_36 = arith.constant 0 : index
      %53 = vector.load %arg10[%c0_35, %c0_36] : memref<8x32xbf16, #tpu.memory_space<vmem>>, vector<8x32xbf16>
      tpu.vector_store %arg10[%c0_35, %c0_36], %52 {strides = array<i32>} : memref<8x32xbf16, #tpu.memory_space<vmem>>, vector<8x32xbf16>,
      %54 = arith.truncf %51 : vector<8x32xf32> to vector<8x32xbf16>
      %c0_37 = arith.constant 0 : index
      %c0_38 = arith.constant 0 : index
      %55 = vector.load %arg11[%c0_37, %c0_38] : memref<8x32xbf16, #tpu.memory_space<vmem>>, vector<8x32xbf16>
      tpu.vector_store %arg11[%c0_37, %c0_38], %54 {strides = array<i32>} : memref<8x32xbf16, #tpu.memory_space<vmem>>, vector<8x32xbf16>,
      %c0_39 = arith.constant 0 : index
      %c0_40 = arith.constant 0 : index
      %56 = vector.load %arg15[%c0_39, %c0_40] : memref<8x32xf32, #tpu.memory_space<vmem>>, vector<8x32xf32>
      %57 = arith.truncf %56 : vector<8x32xf32> to vector<8x32xbf16>
      %c0_41 = arith.constant 0 : index
      %c0_42 = arith.constant 0 : index
      %58 = vector.load %arg12[%c0_41, %c0_42] : memref<8x32xbf16, #tpu.memory_space<vmem>>, vector<8x32xbf16>
      tpu.vector_store %arg12[%c0_41, %c0_42], %57 {strides = array<i32>} : memref<8x32xbf16, #tpu.memory_space<vmem>>, vector<8x32xbf16>,
    } else {
    }
    return
  }
  func.func @transform_0(%arg0: i32, %arg1: i32, %arg2: i32) -> (i32, i32) {
    %c0_i32 = arith.constant 0 : i32
    return %arg0, %arg2 : i32, i32
  }
  func.func @transform_1(%arg0: i32, %arg1: i32, %arg2: i32) -> (i32, i32) {
    %c0_i32 = arith.constant 0 : i32
    return %arg2, %arg1 : i32, i32
  }
  func.func @transform_2(%arg0: i32, %arg1: i32, %arg2: i32) -> (i32, i32) {
    %c0_i32 = arith.constant 0 : i32
    return %arg2, %arg1 : i32, i32
  }
  func.func @transform_3(%arg0: i32, %arg1: i32, %arg2: i32) -> (i32, i32) {
    %c0_i32 = arith.constant 0 : i32
    return %arg2, %arg1 : i32, i32
  }
  func.func @transform_4(%arg0: i32, %arg1: i32, %arg2: i32) -> (i32, i32) {
    %c1_i32 = arith.constant 1 : i32
    %c0_i32 = arith.constant 0 : i32
    %0 = arith.cmpi eq, %c1_i32, %c0_i32 : i32
    %c1_i32_0 = arith.constant 1 : i32
    %1 = arith.select %0, %c1_i32_0, %c1_i32 : i32
    %2 = arith.remsi %arg0, %1 : i32
    %c0_i32_1 = arith.constant 0 : i32
    %3 = arith.cmpi ne, %2, %c0_i32_1 : i32
    %c0_i32_2 = arith.constant 0 : i32
    %4 = arith.cmpi slt, %2, %c0_i32_2 : i32
    %c0_i32_3 = arith.constant 0 : i32
    %5 = arith.cmpi slt, %1, %c0_i32_3 : i32
    %6 = arith.xori %4, %5 : i1
    %7 = arith.andi %6, %3 : i1
    %8 = arith.addi %2, %1 : i32
    %9 = arith.select %7, %8, %2 : i32
    %c0_i32_4 = arith.constant 0 : i32
    %c0_i32_5 = arith.constant 0 : i32
    return %9, %c0_i32_4 : i32, i32
  }
  func.func @transform_5(%arg0: i32, %arg1: i32, %arg2: i32) -> (i32, i32) {
    %c1_i32 = arith.constant 1 : i32
    %c0_i32 = arith.constant 0 : i32
    %0 = arith.cmpi eq, %c1_i32, %c0_i32 : i32
    %c1_i32_0 = arith.constant 1 : i32
    %1 = arith.select %0, %c1_i32_0, %c1_i32 : i32
    %2 = arith.remsi %arg0, %1 : i32
    %c0_i32_1 = arith.constant 0 : i32
    %3 = arith.cmpi ne, %2, %c0_i32_1 : i32
    %c0_i32_2 = arith.constant 0 : i32
    %4 = arith.cmpi slt, %2, %c0_i32_2 : i32
    %c0_i32_3 = arith.constant 0 : i32
    %5 = arith.cmpi slt, %1, %c0_i32_3 : i32
    %6 = arith.xori %4, %5 : i1
    %7 = arith.andi %6, %3 : i1
    %8 = arith.addi %2, %1 : i32
    %9 = arith.select %7, %8, %2 : i32
    %c0_i32_4 = arith.constant 0 : i32
    %c0_i32_5 = arith.constant 0 : i32
    return %9, %c0_i32_4 : i32, i32
  }
  func.func @transform_6(%arg0: i32, %arg1: i32, %arg2: i32) -> (i32, i32) {
    %c1_i32 = arith.constant 1 : i32
    %c0_i32 = arith.constant 0 : i32
    %0 = arith.cmpi eq, %c1_i32, %c0_i32 : i32
    %c1_i32_0 = arith.constant 1 : i32
    %1 = arith.select %0, %c1_i32_0, %c1_i32 : i32
    %2 = arith.remsi %arg0, %1 : i32
    %c0_i32_1 = arith.constant 0 : i32
    %3 = arith.cmpi ne, %2, %c0_i32_1 : i32
    %c0_i32_2 = arith.constant 0 : i32
    %4 = arith.cmpi slt, %2, %c0_i32_2 : i32
    %c0_i32_3 = arith.constant 0 : i32
    %5 = arith.cmpi slt, %1, %c0_i32_3 : i32
    %6 = arith.xori %4, %5 : i1
    %7 = arith.andi %6, %3 : i1
    %8 = arith.addi %2, %1 : i32
    %9 = arith.select %7, %8, %2 : i32
    %c0_i32_4 = arith.constant 0 : i32
    %c0_i32_5 = arith.constant 0 : i32
    return %9, %c0_i32_4 : i32, i32
  }
  func.func @transform_7(%arg0: i32, %arg1: i32, %arg2: i32) -> (i32, i32) {
    %c0_i32 = arith.constant 0 : i32
    return %arg0, %arg1 : i32, i32
  }
  func.func @transform_8(%arg0: i32, %arg1: i32, %arg2: i32) -> (i32, i32) {
    %c0_i32 = arith.constant 0 : i32
    return %arg0, %arg1 : i32, i32
  }
  func.func @transform_9(%arg0: i32, %arg1: i32, %arg2: i32) -> (i32, i32) {
    %c0_i32 = arith.constant 0 : i32
    return %arg0, %arg1 : i32, i32
  }
}

</mosaic_0001>

<bundles_post_ra>
// kernel: tpu_custom_call.1
= control target key start
LH: loop header
LB: loop body
LE: loop exit
PB: predicated region body
PF: predicated region fallthrough
CT: control target
= control target key end

     0   :  { %s2108_s0 = inlined_call_operand.hbm [shape: f32[16,32], index: 0, kind: input, shape index: {}]   ;;  %s2109_s1 = inlined_call_operand.hbm [shape: bf16[32,32], index: 1, kind: input, shape index: {}]   ;;  %s2110_s2 = inlined_call_operand.hbm [shape: bf16[32,32], index: 2, kind: input, shape index: {}]   ;;  %s2111_s3 = inlined_call_operand.hbm [shape: bf16[32,32], index: 3, kind: input, shape index: {}]   ;;  %s2112_s4 = inlined_call_operand.hbm [shape: f32[8,32], index: 4, kind: input, shape index: {}]   ;;  %s2113_s5 = inlined_call_operand.hbm [shape: f32[8,32], index: 5, kind: input, shape index: {}]   ;;  %s2114_s6 = inlined_call_operand.hbm [shape: f32[8,32], index: 6, kind: input, shape index: {}]   ;;  %s2115_s7 = inlined_call_operand.hbm [shape: bf16[16,32], index: 7, kind: output, shape index: {0}]   ;;  %s2116_s8 = inlined_call_operand.hbm [shape: bf16[16,32], index: 8, kind: output, shape index: {1}]   ;;  %s2117_s9 = inlined_call_operand.hbm [shape: bf16[16,32], index: 9, kind: output, shape index: {2}]  }
   0x1   :  { %2127 = sst [smem:[#allocation27_spill]] %s2108_s0 }
   0x2   :  { %2128 = sst [smem:[#allocation28_spill]] %s2109_s1 }
   0x3   :  { %2129 = sst [smem:[#allocation29_spill]] %s2110_s2 }
   0x4   :  { %2130 = sst [smem:[#allocation30_spill]] %s2111_s3 }
   0x5   :  { %2131 = sst [smem:[#allocation31_spill]] %s2112_s4 }
   0x6   :  { %2132 = sst [smem:[#allocation32_spill]] %s2113_s5 }
   0x7   :  { %2133 = sst [smem:[#allocation33_spill]] %s2115_s7 }
   0x8   :  { %2134 = sst [smem:[#allocation34_spill]] %s2116_s8 }
   0x9   :  { %2135 = sst [smem:[#allocation35_spill]] %s2117_s9 }
   0xa   :  { %15 = vsyncpa [#allocation6], 0 }
   0xb   :  { %17 = vsyncpa [#allocation6 + $0x1], 0 }
   0xc   :  { %18 = vsyncpa [#allocation9], 0 }
   0xd   :  { %19 = vsyncpa [#allocation12], 0 }
   0xe   :  { %20 = vsyncpa [#allocation15], 0 }
   0xf   :  { %21 = vsyncpa [#allocation7], 0 }
  0x10   :  { %23 = vsyncpa [#allocation7 + $0x1], 0 }
  0x11   :  { %24 = vsyncpa [#allocation19], 0 }
  0x12   :  { %26 = vsyncpa [#allocation19 + $0x1], 0  ;;  %s1672_s30 = smov 0   ;;  %s1674_s10 = smov 0  }
  0x13   :  { %s1676_s11 = smov 0   ;;  %s1678_s12 = smov 0  }
  0x14   :  { %s1680_s13 = smov 0   ;;  %s1682_s14 = smov 0  }
  0x15 LB: > { %s1703_s15 = sadd.s32 4294967295, %s1602_s14   ;;  %p1032_p0 = scmp.ge.s32.totalorder %s1602_s14, 1  ;;  %s1602_s14 = sphi %s1682_s14, %s32_s14   ;;  %s1598_s13 = sphi %s1680_s13, %s2172_s13   ;;  %s1594_s12 = sphi %s1678_s12, %s2171_s12   ;;  %s1590_s11 = sphi %s1676_s11, %s2170_s11   ;;  %s1586_s10 = sphi %s1674_s10, %s2169_s10   ;;  %s1582_s30 = sphi %s1672_s30, %s2168_s30  }
  0x16   : > { %p2121_p1 = scmp.eq.s32.totalorder %s1703_s15, 0  ;;  %p315_p2 = scmp.lt.s32.totalorder %s1602_s14, 3 }
  0x17   : > { %s1604_s17 = smov [#allocation8]   ;;  %s1605_s20 = smov [#allocation11]  }
  0x18   : > { %p1708_p3 = pnand %p1032_p0, %p315_p2  ;;  %s331_s18 = sshll.u32 %s1604_s17, 4  ;;  %s1712_s18 = int_to_ptr.vmem [resolvable:$true] %s331_s18 }
  0x19   : > { %s365_s21 = sshll.u32 %s1605_s20, 4  ;;  %s1606_s22 = smov [#allocation14]   ;;  %s1723_s21 = int_to_ptr.vmem [resolvable:$true] %s365_s21 }
  0x1a   : > { %s2136_s16 = scalar_select %p1708_p3, 1, 0 }
  0x1b   : > { %p1135_p4 = pneg %p1708_p3  ;;  %s1725_s23 = sshll.u32 %s1606_s22, 4  ;;  %s391_s23 = int_to_ptr.vmem [resolvable:$true] %s1725_s23 }
  0x1c   : > { %s2138_s1 = sld [smem:[#allocation28_spill]] }
  0x1d   : > { %p1719_p6 = pnand %p1135_p4, %p2121_p1 }
  0x1f   : > { %p1735_p8 = pneg %p1719_p6 }
  0x22   : > { %s1250_s26 = scalar_lea.hbm %s2138_s1, 256 }
  0x23   : > { %p1251_p7 = scmp.ne.s32.totalorder %s2138_s1, %s1250_s26  ;;  %p1257_p11 = scmp.lt.u32.totalorder %s1250_s26, %s2138_s1 }
  0x25   : > { %p1253_p9 = pnand %p1735_p8, %p1251_p7 }
  0x27   : > { %p1254_p10 = pneg %p1253_p9 }
  0x29   : > { %p1259_p12 = pnand %p1257_p11, %p1254_p10 }
  0x2b   : > { %1262 = shalt.err (!%p1259_p12)
}
  0x2c   : > { %s1263_s22 = scalar_lea.vmem %s1712_s18, 256  ;;  %p1271_p4 = scmp.lt.s32.totalorder %s1712_s18, %s1712_s18 }
  0x2d   : > { %p1264_p13 = scmp.ne.s32.totalorder %s1712_s18, %s1263_s22  ;;  %p1272_p5 = scmp.lt.s32.totalorder %s1263_s22, %s1263_s22 }
  0x2f   : > { %p1266_p0 = pnand %p1264_p13, %p1735_p8  ;;  %p1273_p7 = por %p1272_p5, %p1271_p4 }
  0x31   : > { %p1267_p2 = pneg %p1266_p0 }
  0x33   : > { %p1274_p9 = pnand %p1273_p7, %p1267_p2 }
  0x35   : > { %1277 = shalt.err (!%p1274_p9)
}
  0x36   : > { %s2123_s24 = smov 64   ;;  %s1608_s25 = smov 4  }
  0x37   : > { %1138 = dma.hbm_to_vmem [thread:$0]  (!%p1719_p6), %s2138_s1, 256, %s1712_s18, [#allocation9], %s2123_s24, %s2123_s24, %s1608_s25  }
  0x38   : > { %s2140_s3 = sld [smem:[#allocation30_spill]] }
  0x3e   : > { %s1278_s20 = scalar_lea.hbm %s2140_s3, 256 }
  0x3f   : > { %p1279_p5 = scmp.ne.s32.totalorder %s2140_s3, %s1278_s20  ;;  %p1285_p12 = scmp.lt.u32.totalorder %s1278_s20, %s2140_s3 }
  0x41   : > { %p1281_p10 = pnand %p1279_p5, %p1735_p8 }
  0x43   : > { %p1282_p11 = pneg %p1281_p10 }
  0x45   : > { %p1287_p13 = pnand %p1285_p12, %p1282_p11 }
  0x47   : > { %1290 = shalt.err (!%p1287_p13)
}
  0x48   : > { %s1291_s18 = scalar_lea.vmem %s1723_s21, 256  ;;  %p1299_p7 = scmp.lt.s32.totalorder %s1723_s21, %s1723_s21 }
  0x49   : > { %p1292_p0 = scmp.ne.s32.totalorder %s1723_s21, %s1291_s18  ;;  %p1300_p9 = scmp.lt.s32.totalorder %s1291_s18, %s1291_s18 }
  0x4b   : > { %p1294_p2 = pnand %p1292_p0, %p1735_p8  ;;  %p1301_p5 = por %p1300_p9, %p1299_p7 }
  0x4d   : > { %p1295_p4 = pneg %p1294_p2 }
  0x4f   : > { %p1302_p10 = pnand %p1301_p5, %p1295_p4 }
  0x51   : > { %1305 = shalt.err (!%p1302_p10)
}
  0x52   : > { %1144 = dma.hbm_to_vmem [thread:$0]  (!%p1719_p6), %s2140_s3, 256, %s1723_s21, [#allocation12], %s2123_s24, %s2123_s24, %s1608_s25  }
  0x53   : > { %s2141_s5 = sld [smem:[#allocation32_spill]] }
  0x59   : > { %s1306_s27 = scalar_lea.hbm %s2141_s5, 128 }
  0x5a   : > { %p1307_p11 = scmp.ne.s32.totalorder %s2141_s5, %s1306_s27  ;;  %p1313_p0 = scmp.lt.u32.totalorder %s1306_s27, %s2141_s5 }
  0x5c   : > { %p1309_p12 = pnand %p1307_p11, %p1735_p8 }
  0x5e   : > { %p1310_p13 = pneg %p1309_p12 }
  0x60   : > { %p1315_p2 = pnand %p1313_p0, %p1310_p13 }
  0x62   : > { %1318 = shalt.err (!%p1315_p2)
}
  0x63   : > { %s1319_s18 = scalar_lea.vmem %s391_s23, 128  ;;  %p1327_p5 = scmp.lt.s32.totalorder %s391_s23, %s391_s23 }
  0x64   : > { %p1320_p4 = scmp.ne.s32.totalorder %s391_s23, %s1319_s18  ;;  %p1328_p10 = scmp.lt.s32.totalorder %s1319_s18, %s1319_s18 }
  0x66   : > { %p1322_p7 = pnand %p1320_p4, %p1735_p8  ;;  %p1329_p1 = por %p1328_p10, %p1327_p5 }
  0x68   : > { %p1323_p9 = pneg %p1322_p7 }
  0x6a   : > { %p1330_p3 = pnand %p1329_p1, %p1323_p9 }
  0x6c   : > { %1333 = shalt.err (!%p1330_p3)
}
  0x6d   : > { %1150 = dma.hbm_to_vmem [thread:$0]  (!%p1719_p6), %s2141_s5, 128, %s391_s23, [#allocation15]  }
  0x6e   : > { %s1609_s8 = smov [#allocation10]   ;;  %s1610_s26 = smov [#allocation13]  }
  0x6f   : > { %s348_s9 = sshll.u32 %s1609_s8, 4  ;;  %s379_s27 = sshll.u32 %s1610_s26, 4  ;;  %s349_s9 = int_to_ptr.vmem [resolvable:$true] %s348_s9  ;;  %s380_s27 = int_to_ptr.vmem [resolvable:$true] %s379_s27 }
  0x70   : > { %s2142_s2 = sld [smem:[#allocation29_spill]] }
  0x76   : > { %s1334_s20 = scalar_lea.hbm %s2142_s2, 256 }
  0x77   : > { %p1335_p1 = scmp.ne.s32.totalorder %s2142_s2, %s1334_s20  ;;  %p1341_p12 = scmp.lt.u32.totalorder %s1334_s20, %s2142_s2 }
  0x79   : > { %p1337_p3 = pnand %p1335_p1, %p1735_p8 }
  0x7b   : > { %p1338_p11 = pneg %p1337_p3 }
  0x7d   : > { %p1343_p13 = pnand %p1341_p12, %p1338_p11 }
  0x7f   : > { %1346 = shalt.err (!%p1343_p13)
}
  0x80   : > { %s1347_s23 = scalar_lea.vmem %s349_s9, 256  ;;  %p1355_p7 = scmp.lt.s32.totalorder %s349_s9, %s349_s9 }
  0x81   : > { %p1348_p0 = scmp.ne.s32.totalorder %s349_s9, %s1347_s23  ;;  %p1356_p9 = scmp.lt.s32.totalorder %s1347_s23, %s1347_s23 }
  0x83   : > { %p1350_p2 = pnand %p1348_p0, %p1735_p8  ;;  %p1357_p5 = por %p1356_p9, %p1355_p7 }
  0x85   : > { %p1351_p4 = pneg %p1350_p2 }
  0x87   : > { %p1358_p10 = pnand %p1357_p5, %p1351_p4 }
  0x89   : > { %1361 = shalt.err (!%p1358_p10)
}
  0x8a   : > { %s2143_s7 = smov 64   ;;  %s2144_s4 = sld [smem:[#allocation31_spill]] }
  0x8b   : > { %1141 = dma.hbm_to_vmem [thread:$0]  (!%p1719_p6), %s2142_s2, 256, %s349_s9, [#allocation9], %s2143_s7, %s2143_s7, %s1608_s25  }
  0x90   : > { %s1362_s17 = scalar_lea.hbm %s2144_s4, 128 }
  0x91   : > { %p1363_p1 = scmp.ne.s32.totalorder %s2144_s4, %s1362_s17  ;;  %p1369_p12 = scmp.lt.u32.totalorder %s1362_s17, %s2144_s4 }
  0x93   : > { %p1365_p3 = pnand %p1363_p1, %p1735_p8 }
  0x95   : > { %p1366_p11 = pneg %p1365_p3 }
  0x97   : > { %p1371_p13 = pnand %p1369_p12, %p1366_p11 }
  0x99   : > { %1374 = shalt.err (!%p1371_p13)
}
  0x9a   : > { %s1375_s23 = scalar_lea.vmem %s380_s27, 128  ;;  %p1383_p7 = scmp.lt.s32.totalorder %s380_s27, %s380_s27 }
  0x9b   : > { %p1376_p0 = scmp.ne.s32.totalorder %s380_s27, %s1375_s23  ;;  %p1384_p9 = scmp.lt.s32.totalorder %s1375_s23, %s1375_s23 }
  0x9d   : > { %p1378_p2 = pnand %p1376_p0, %p1735_p8  ;;  %p1385_p5 = por %p1384_p9, %p1383_p7 }
  0x9f   : > { %p1379_p4 = pneg %p1378_p2 }
  0xa1   : > { %p1386_p10 = pnand %p1385_p5, %p1379_p4 }
  0xa3   : > { %1389 = shalt.err (!%p1386_p10)
}
  0xa4   : > { %1147 = dma.hbm_to_vmem [thread:$0]  (!%p1719_p6), %s2144_s4, 128, %s380_s27, [#allocation12]  }
  0xa5   : > { %s1611_s7 = smov [#allocation16]   ;;  %s1390_s28 = scalar_lea.hbm %s2114_s6, 128 }
  0xa6   : > { %s401_s24 = sshll.u32 %s1611_s7, 4  ;;  %p1391_p1 = scmp.ne.s32.totalorder %s2114_s6, %s1390_s28  ;;  %s402_s24 = int_to_ptr.vmem [resolvable:$true] %s401_s24 }
  0xa7   : > { %p1397_p12 = scmp.lt.u32.totalorder %s1390_s28, %s2114_s6 }
  0xa8   : > { %p1393_p3 = pnand %p1391_p1, %p1735_p8 }
  0xaa   : > { %p1394_p11 = pneg %p1393_p3 }
  0xac   : > { %p1399_p13 = pnand %p1397_p12, %p1394_p11 }
  0xae   : > { %1402 = shalt.err (!%p1399_p13)
}
  0xaf   : > { %s1403_s27 = scalar_lea.vmem %s402_s24, 128  ;;  %p1411_p7 = scmp.lt.s32.totalorder %s402_s24, %s402_s24 }
  0xb0   : > { %p1404_p0 = scmp.ne.s32.totalorder %s402_s24, %s1403_s27  ;;  %p1412_p9 = scmp.lt.s32.totalorder %s1403_s27, %s1403_s27 }
  0xb2   : > { %p1406_p2 = pnand %p1404_p0, %p1735_p8  ;;  %p1413_p5 = por %p1412_p9, %p1411_p7 }
  0xb4   : > { %p1407_p4 = pneg %p1406_p2 }
  0xb6   : > { %p1414_p10 = pnand %p1413_p5, %p1407_p4 }
  0xb8   : > { %1417 = shalt.err (!%p1414_p10)
}
  0xb9   : > { %1153 = dma.hbm_to_vmem [thread:$0]  (!%p1719_p6), %s2114_s6, 128, %s402_s24, [#allocation15]  }
  0xba   : > { %s2124_s29 = sadd.s32 4294967294, %s1602_s14   ;;  %s51_s25 = sadd.s32 1, %s1598_s13 }
  0xbb   : > { %p53_p8 = scmp.ge.s32.totalorder %s51_s25, 2  ;;  %s60_s19 = sadd.s32 1, %s1590_s11 }
  0xbc   : > { %p67_p1 = scmp.ne.s32.totalorder %s1590_s11, %s1586_s10  ;;  %p68_p3 = scmp.eq.s32.totalorder %s1602_s14, 0 }
  0xbd   : > { %s2174_s25 = smov (%p53_p8, %s51_s25), 0  ;;  %p73_p12 = scmp.ne.s32.totalorder %s1586_s10, %s1582_s30 }
  0xbe   : > { %p1869_p11 = por %p68_p3, %p67_p1  ;;  %s55_s7 = ssub.s32 %s1598_s13, %s2174_s25 }
  0xbf   : > { %p246_p6 = scmp.eq.s32.totalorder %s1703_s15, 1  ;;  %p58_p13 = scmp.eq.s32.totalorder %s55_s7, 0 }
  0xc0   : > { %p2146_p0 = scmp.eq.s32.totalorder %s1703_s15, 0  ;;  %p252_p7 = scmp.eq.s32.totalorder %s2124_s29, 1 }
  0xc1   : > { %p1884_p4 = por %p246_p6, %p67_p1  ;;  %p1174_p5 = scmp.lt.s32.totalorder %s1602_s14, 2 }
  0xc2   : > { %p1880_p2 = por %p2146_p0, %p73_p12  ;;  %p1893_p9 = por %p252_p7, %p73_p12 }
  0xc3   : > { %s2148_s8 = scalar_select %p1884_p4, 1, 0 }
  0xc4   : > { %s1891_s26 = scalar_select %p58_p13, %s1590_s11, %s60_s19  }
  0xc5   : > { %s2149_s28 = scalar_select %p1893_p9, 1, 0 }
  0xc6   : > { %s412_s17 = sand.u32 1, %s1590_s11   ;;  %s1041_s20 = sshll.u32 %s1598_s13, 7 }
  0xc7   : > { %s1040_s22 = sshll.u32 %s412_s17, 3  ;;  %s2150_s0 = sld [smem:[#allocation27_spill]] }
  0xc8   : > { %s416_s23 = scalar_lea.vmem [#allocation5], %s1040_s22  ;;  %p1907_p10 = pnand %p1174_p5, %p1869_p11 }
  0xc9   : > { %s424_s19 = sshll.u32 %s416_s23, 4  ;;  %s413_s29 = scalar_lea.sflag [#allocation6], %s412_s17  ;;  %s1911_s19 = int_to_ptr.vmem [resolvable:$true] %s424_s19 }
  0xca   : > { %p1420_p1 = pneg %p1907_p10 }
  0xcd   : > { %s1903_s21 = scalar_lea.hbm %s2150_s0, %s1041_s20  ;;  %s1423_s9 = scalar_lea.hbm %s2150_s0, 256 }
  0xce   : > { %s1418_s1 = scalar_lea.hbm %s1903_s21, 128  ;;  %p1424_p11 = scmp.lt.u32.totalorder %s1903_s21, %s2150_s0 }
  0xcf   : > { %p1419_p8 = scmp.ne.s32.totalorder %s1903_s21, %s1418_s1  ;;  %p1425_p6 = scmp.lt.u32.totalorder %s1423_s9, %s1418_s1 }
  0xd0   : > { %p1427_p0 = scmp.lt.u32.totalorder %s1418_s1, %s1903_s21 }
  0xd1   : > { %p1421_p3 = pnand %p1420_p1, %p1419_p8  ;;  %p1426_p13 = por %p1425_p6, %p1424_p11 }
  0xd3   : > { %p1422_p12 = pneg %p1421_p3  ;;  %p1428_p7 = por %p1427_p0, %p1426_p13 }
  0xd5   : > { %p1429_p5 = pnand %p1428_p7, %p1422_p12 }
  0xd7   : > { %1432 = shalt.err (!%p1429_p5)
}
  0xd8   : > { %s1433_s17 = scalar_lea.vmem %s1911_s19, 128  ;;  %s1612_s23 = smov [#allocation5]  }
  0xd9   : > { %p1434_p8 = scmp.ne.s32.totalorder %s1911_s19, %s1433_s17  ;;  %s1438_s20 = sshll.u32 %s1612_s23, 4  ;;  %s1439_s20 = int_to_ptr.vmem [resolvable:$false] %s1438_s20 }
  0xda   : > { %s1440_s22 = scalar_lea.vmem %s1439_s20, 256  ;;  %p1441_p4 = scmp.lt.s32.totalorder %s1911_s19, %s1439_s20 }
  0xdb   : > { %p1436_p3 = pnand %p1434_p8, %p1420_p1  ;;  %p1442_p11 = scmp.lt.s32.totalorder %s1440_s22, %s1433_s17 }
  0xdd   : > { %p1437_p9 = pneg %p1436_p3  ;;  %p1443_p6 = por %p1442_p11, %p1441_p4 }
  0xdf   : > { %p1444_p13 = pnand %p1443_p6, %p1437_p9 }
  0xe1   : > { %1447 = shalt.err (!%p1444_p13)
}
  0xe2   : > { %1157 = dma.hbm_to_vmem [thread:$0]  (!%p1907_p10), %s1903_s21, 128, %s1911_s19, %s413_s29  }
  0xe3   : > { %p2152_p12 = scmp.ne.s32.totalorder %s2136_s16, 0 }
  0xe4   : > { %s1941_s1 = sand.u32 (!%p2152_p12), 1, %s1586_s10  }
  0xe5   : > { %433 = sbr.rel (%p2152_p12) target bundleno = 671 (0x29f), region = 48  ;;  %s1043_s9 = sshll.u32 (!%p2152_p12), %s1941_s1, 3 }
  0xe6   : > { %s436_s18 = scalar_lea.sflag (!%p2152_p12), [#allocation6], %s1941_s1  ;;  %s439_s27 = scalar_lea.vmem (!%p2152_p12), [#allocation5], %s1043_s9 }
  0xec   : > { %1557 = dma.done.wait (%p1880_p2), %s436_s18, 128  }
  0xed   : > { %1559 = vsyncadd (%p1880_p2), %s436_s18, 4294967168  ;;  %p2153_p4 = scmp.eq.s32.totalorder %s1703_s15, 0 }
  0xef   : > { %1561 = dma.done.wait (%p2153_p4), [#allocation9], 512   ;;  %p2154_p9 = pmov %p2153_p4 }
  0xf0   : > { %p2155_p10 = pmov %p2153_p4 }
  0xf1   : > { %1563 = vsyncadd (%p2154_p9), [#allocation9], 4294966784 }
  0xf2   : > { %1565 = dma.done.wait (%p2155_p10), [#allocation12], 384   ;;  %p2156_p1 = pmov %p2153_p4 }
  0xf4   : > { %1567 = vsyncadd (%p2156_p1), [#allocation12], 4294966912  ;;  %p2157_p0 = pmov %p2156_p1 }
  0xf6   : > { %1569 = dma.done.wait (%p2157_p0), [#allocation15], 256   ;;  %p2158_p7 = pmov %p2157_p0 }
  0xf7   : > { %vm516_vm0 = vcmask 261120   ;;  %v1613_v0 = vmov 0.0   ;;  %vm1614_vm1 = vmmov 0   ;;  %v1244_v1 = vld [vmem:[#allocation8] sm:$0xff]   ;;  %v1245_v2 = vld [vmem:[#allocation10] sm:$0xff]   ;;  %v1246_v3 = vld [vmem:[#allocation8 + $0x8] sm:$0xff]  }
  0xf8   : > { %1571 = vsyncadd (%p2158_p7), [#allocation15], 4294967040  ;;  %1079 = vmatprep.subr.bf16.mxu0 %v1613_v0  ;;  %1087 = vmatprep.subr.bf16.mxu1 %v1613_v0  ;;  %517 = vst.msk [vmem:[#allocation2] sm:$0xff] %vm516_vm0, %v1613_v0  ;;  %v1247_v4 = vld [vmem:[#allocation10 + $0x8] sm:$0xff]   ;;  %v1248_v7 = vld [vmem:[#allocation11] sm:$0xff]   ;;  %s1615_s16 = smov 124  }
  0xf9   : > { %518 = vst.msk [vmem:[#allocation3] sm:$0xff] %vm516_vm0, %v1613_v0  ;;  %519 = vst.msk [vmem:[#allocation4] sm:$0xff] %vm516_vm0, %v1613_v0  ;;  %1083 = vmatprep.mubr.msk.bf16.mxu0 %vm1614_vm1, %v1613_v0  ;;  %1091 = vmatprep.mubr.msk.bf16.mxu1 %vm1614_vm1, %v1613_v0  ;;  %v520_v5 = vld [vmem:[%s439_s27] sm:$0xff]  ;;  %v1249_v8 = vld [vmem:[#allocation11 + $0x8] sm:$0xff]   ;;  %s1616_s29 = smov 28   ;;  %s1617_s24 = smov 100  }
  0xfa   : > { %1080 = vmatpush3.bf16.msra.mxu0 %v1244_v1  ;;  %1088 = vmatpush3.bf16.msra.mxu1 %v1245_v2  ;;  %v521_v6 = vpack.c.bf16 %v520_v5, %v520_v5  ;;  %s1618_s21 = smov 4   ;;  %s1974_s19 = sshll.u32 %s1941_s1, 2  ;;  %vm755_vm2 = vcmask 257024   ;;  %vm717_vm3 = vcmask 228352   ;;  %v707_v33 = vld [vmem:[#allocation14] sm:$0xff]  ;;  %v706_v37 = vld [vmem:[#allocation13] sm:$0xff] }
  0xfb   : > { %1081 = vmatprep.subr.bf16.mxu0 %v1613_v0  ;;  %1089 = vmatprep.subr.bf16.mxu1 %v1613_v0  ;;  %s507_s7 = scalar_lea.vmem [#allocation20], %s1974_s19  ;;  %vm725_vm4 = vcmask 31744   ;;  %v708_v40 = vld [vmem:[#allocation16] sm:$0xff]  ;;  %s1065_s23 = sshll.u32 %s1594_s12, 6 }
  0xfc   : > { %s493_s20 = scalar_lea.vmem [#allocation17], %s1974_s19  ;;  %s2126_s9 = scalar_lea.vmem [#allocation18], %s1974_s19 }
  0xfd   : > { %s787_s22 = sshll.u32 %s493_s20, 4  ;;  %s801_s18 = sshll.u32 %s2126_s9, 4  ;;  %s1993_s22 = int_to_ptr.vmem [resolvable:$true] %s787_s22  ;;  %s2000_s18 = int_to_ptr.vmem [resolvable:$true] %s801_s18 }
  0xfe   : > { %1082 = vmatpush3.bf16.msra.mxu0 %v1246_v3  ;;  %1090 = vmatpush3.bf16.msra.mxu1 %v1247_v4  ;;  %s815_s27 = sshll.u32 %s507_s7, 4  ;;  %s2160_s0 = sld [smem:[#allocation34_spill]]  ;;  %s2008_s27 = int_to_ptr.vmem [resolvable:$true] %s815_s27 }
  0xff   : > { %1095 = vmatprep.subr.bf16.mxu0 %v1613_v0  ;;  %v522_v9 = vld [vmem:[#allocation2] sm:$0xff]  ;;  %s763_s3 = scalar_lea.sflag [#allocation7], %s1941_s1  ;;  %s1448_s4 = scalar_lea.vmem %s1993_s22, 64 }
 0x100   : > { %v585_v10 = vld [vmem:[#allocation3] sm:$0xff]  ;;  %v644_v21 = vld [vmem:[#allocation4] sm:$0xff]  ;;  %p1449_p2 = scmp.ne.s32.totalorder %s1993_s22, %s1448_s4  ;;  %p2162_p5 = scmp.ne.s32.totalorder %s2148_s8, 0 }
 0x101   : > { %1084 = vmatmul.mubr.msk.bf16.vlgmr.msra.gmra.mrb[0].mxu0 %vm516_vm0, %v521_v6  ;;  %1092 = vmatmul.mubr.msk.bf16.vlgmr.msra.gmra.mrb[0].mxu1 %vm516_vm0, %v521_v6  ;;  %s1619_s17 = smov [#allocation17]  }
 0x102   : > { %1096 = vmatpush3.bf16.msra.mxu0 %v1248_v7  ;;  %1099 = vmatprep.mubr.msk.bf16.mxu0 %vm1614_vm1, %v1613_v0  ;;  %p1450_p8 = pnand %p1449_p2, %p2162_p5  ;;  %s1452_s12 = sshll.u32 %s1619_s17, 4  ;;  %s1453_s12 = int_to_ptr.vmem [resolvable:$false] %s1452_s12 }
 0x103   : > { %1097 = vmatprep.subr.bf16.mxu0 %v1613_v0  ;;  %s1454_s5 = scalar_lea.vmem %s1453_s12, 128  ;;  %p1455_p11 = scmp.lt.s32.totalorder %s1993_s22, %s1453_s12 }
 0x104   : > { %s1998_s2 = scalar_lea.hbm %s2160_s0, %s1065_s23  ;;  %p1451_p3 = pneg %p1450_p8 }
 0x105   : > { %p1456_p6 = scmp.lt.s32.totalorder %s1454_s5, %s1448_s4 }
 0x106   : > { %1098 = vmatpush3.bf16.msra.mxu0 %v1249_v8 }
 0x107   : > { %p1457_p13 = por %p1456_p6, %p1455_p11 }
 0x109   : > { %1100 = vmatmul.mubr.msk.bf16.vlgmr.msra.gmra.mrb[4].mxu0 %vm516_vm0, %v521_v6  ;;  %p1458_p12 = pnand %p1457_p13, %p1451_p3 }
 0x1d4   : > { %v577_v11 = vpop.f32.mrb[0].mxu0  ;;  %v636_v13 = vpop.f32.mrb[0].mxu1 }
 0x1d5   : > { %v583_v12 = vadd.f32 %v577_v11, %v522_v9  ;;  %v1085_v14 = vpop.f32.mrb[1].mxu0  ;;  %v642_v15 = vadd.f32 %v636_v13, %v585_v10  ;;  %v1093_v16 = vpop.f32.mrb[1].mxu1 }
 0x1d6   : > { %v580_v17 = vpop.f32.mrb[2].mxu0  ;;  %v639_v18 = vpop.f32.mrb[2].mxu1 }
 0x1d7   : > { %584 = vst.msk [vmem:[#allocation2] sm:$0xff] %vm516_vm0, %v583_v12  ;;  %v1086_v19 = vpop.f32.mrb[3].mxu0  ;;  %643 = vst.msk [vmem:[#allocation3] sm:$0xff] %vm516_vm0, %v642_v15  ;;  %v1094_v20 = vpop.f32.mrb[3].mxu1 }
 0x1dc   : > { %v695_v22 = vpop.f32.mrb[4].mxu0 }
 0x1dd   : > { %v701_v23 = vadd.f32 %v695_v22, %v644_v21  ;;  %v1101_v24 = vpop.f32.mrb[5].mxu0 }
 0x1de   : > { %v709_v25 = vld [vmem:[#allocation2] sm:$0xff]  ;;  %v698_v26 = vpop.f32.mrb[6].mxu0  ;;  %v733_v27 = vld [vmem:[#allocation3] sm:$0xff] }
 0x1df   : > { %711 = vrot.lane.b32.xlu0 %v709_v25, %s1615_s16  ;;  %702 = vst.msk [vmem:[#allocation4] sm:$0xff] %vm516_vm0, %v701_v23  ;;  %v1102_v28 = vpop.f32.mrb[7].mxu0  ;;  %735 = vrot.lane.b32.xlu1 %v733_v27, %s1615_s16  ;;  %v727_v42 = vmul.f32 %v709_v25, %v706_v37  ;;  %v749_v49 = vmul.f32 %v733_v27, %v706_v37  ;;  %s2161_s16 = sld [smem:[#allocation35_spill]] }
 0x1e3   : > { %714 = vrot.lane.b32.xlu0 %v709_v25, %s1616_s29  ;;  %738 = vrot.lane.b32.xlu1 %v733_v27, %s1616_s29 }
 0x1e5   : > { %s2006_s29 = scalar_lea.hbm %s2161_s16, %s1065_s23 }
 0x1e6   : > { %v759_v29 = vld [vmem:[#allocation4] sm:$0xff] }
 0x1e7   : > { %719 = vrot.lane.b32.xlu0 %v709_v25, %s1617_s24  ;;  %v760_v30 = vpack.c.bf16 %v759_v29, %v759_v29  ;;  %722 = vrot.lane.b32.xlu1 %v709_v25, %s1618_s21 }
 0x1e9   : > { %761 = vst.msk [vmem:[%s507_s7] sm:$0xf] %vm755_vm2, %v760_v30 }
 0x1eb   : > { %742 = vrot.lane.b32.xlu0 %v733_v27, %s1617_s24  ;;  %745 = vrot.lane.b32.xlu1 %v733_v27, %s1618_s21  ;;  %s2159_s24 = sld [smem:[#allocation33_spill]] }
 0x1f1   : > { %s1991_s21 = scalar_lea.hbm %s2159_s24, %s1065_s23 }
 0x251   : > { %v712_v31 = vpop.permute.xlu0 %711  ;;  %v736_v32 = vpop.permute.xlu1 %735 }
 0x255   : > { %v715_v34 = vpop.permute.xlu0 %714  ;;  %v739_v35 = vpop.permute.xlu1 %738 }
 0x256   : > { %v718_v36 = vsel %vm717_vm3, %v712_v31, %v715_v34  ;;  %v741_v39 = vsel %vm717_vm3, %v736_v32, %v739_v35 }
 0x257   : > { %v728_v38 = vmul.f32 %v718_v36, %v707_v33  ;;  %v750_v45 = vmul.f32 %v741_v39, %v707_v33 }
 0x259   : > { %v720_v41 = vpop.permute.xlu0 %719  ;;  %v723_v43 = vpop.permute.xlu1 %722  ;;  %v729_v46 = vadd.f32 %v728_v38, %v727_v42  ;;  %v751_v53 = vadd.f32 %v750_v45, %v749_v49 }
 0x25a   : > { %v726_v44 = vsel %vm725_vm4, %v720_v41, %v723_v43 }
 0x25b   : > { %v730_v47 = vmul.f32 %v726_v44, %v708_v40 }
 0x25d   : > { %v743_v48 = vpop.permute.xlu0 %742  ;;  %v731_v50 = vadd.f32 %v730_v47, %v729_v46  ;;  %v746_v51 = vpop.permute.xlu1 %745 }
 0x25e   : > { %v748_v52 = vsel %vm725_vm4, %v743_v48, %v746_v51 }
 0x25f   : > { %v732_v54 = vmul.f32 0.35355338, %v731_v50  ;;  %v752_v55 = vmul.f32 %v748_v52, %v708_v40 }
 0x261   : > { %v754_v56 = vpack.c.bf16 %v732_v54, %v732_v54  ;;  %v753_v57 = vadd.f32 %v752_v55, %v751_v53 }
 0x263   : > { %v757_v58 = vpack.c.bf16 %v753_v57, %v753_v57  ;;  %756 = vst.msk [vmem:[%s493_s20] sm:$0xf] %vm755_vm2, %v754_v56 }
 0x264   : > { %1461 = shalt.err (!%p1458_p12)
}
 0x265   : > { %s1462_s1 = scalar_lea.hbm %s1991_s21, 64  ;;  %s1466_s9 = scalar_lea.hbm %s2159_s24, 128 }
 0x266   : > { %p1463_p4 = scmp.ne.s32.totalorder %s1991_s21, %s1462_s1  ;;  %p1467_p1 = scmp.lt.u32.totalorder %s1991_s21, %s2159_s24 }
 0x267   : > { %p1468_p0 = scmp.lt.u32.totalorder %s1466_s9, %s1462_s1  ;;  %p1470_p2 = scmp.lt.u32.totalorder %s1462_s1, %s1991_s21 }
 0x268   : > { %p1464_p9 = pnand %p1463_p4, %p2162_p5 }
 0x269   : > { %p1469_p7 = por %p1468_p0, %p1467_p1 }
 0x26a   : > { %p1465_p10 = pneg %p1464_p9 }
 0x26b   : > { %p1471_p8 = por %p1470_p2, %p1469_p7 }
 0x26d   : > { %p1472_p3 = pnand %p1471_p8, %p1465_p10 }
 0x26f   : > { %1475 = shalt.err (!%p1472_p3)
}
 0x270   : > { %1129 = dma.vmem_to_hbm [thread:$0]  (%p2162_p5), %s1993_s22, 64, %s1991_s21, %s763_s3  }
 0x271   : > { %s2163_s4 = scalar_lea.vmem [#allocation18], %s1974_s19  ;;  %s2164_s5 = sand.u32 1, %s1703_s15  }
 0x272   : > { %758 = vst.msk [vmem:[%s2163_s4] sm:$0xf] %vm755_vm2, %v757_v58  ;;  %s2037_s12 = scalar_lea.sflag [#allocation19], %s2164_s5  ;;  %s1476_s1 = scalar_lea.vmem %s2000_s18, 64 }
 0x273   : > { %p1477_p11 = scmp.ne.s32.totalorder %s2000_s18, %s1476_s1  ;;  %s1620_s23 = smov [#allocation18]  }
 0x274   : > { %s1480_s20 = sshll.u32 %s1620_s23, 4  ;;  %s1481_s20 = int_to_ptr.vmem [resolvable:$false] %s1480_s20 }
 0x275   : > { %p1478_p6 = pnand %p1477_p11, %p2162_p5  ;;  %s1482_s9 = scalar_lea.vmem %s1481_s20, 128 }
 0x276   : > { %p1483_p12 = scmp.lt.s32.totalorder %s2000_s18, %s1481_s20  ;;  %p1484_p4 = scmp.lt.s32.totalorder %s1482_s9, %s1476_s1 }
 0x277   : > { %p1479_p13 = pneg %p1478_p6 }
 0x278   : > { %p1485_p9 = por %p1484_p4, %p1483_p12 }
 0x27a   : > { %p1486_p10 = pnand %p1485_p9, %p1479_p13 }
 0x27c   : > { %1489 = shalt.err (!%p1486_p10)
}
 0x27d   : > { %s1490_s3 = scalar_lea.hbm %s1998_s2, 64  ;;  %s1494_s22 = scalar_lea.hbm %s2160_s0, 128 }
 0x27e   : > { %p1491_p1 = scmp.ne.s32.totalorder %s1998_s2, %s1490_s3  ;;  %p1495_p2 = scmp.lt.u32.totalorder %s1998_s2, %s2160_s0 }
 0x27f   : > { %p1496_p8 = scmp.lt.u32.totalorder %s1494_s22, %s1490_s3  ;;  %p1498_p11 = scmp.lt.u32.totalorder %s1490_s3, %s1998_s2 }
 0x280   : > { %p1492_p0 = pnand %p1491_p1, %p2162_p5 }
 0x281   : > { %p1497_p3 = por %p1496_p8, %p1495_p2 }
 0x282   : > { %p1493_p7 = pneg %p1492_p0 }
 0x283   : > { %p1499_p6 = por %p1498_p11, %p1497_p3 }
 0x285   : > { %p1500_p13 = pnand %p1499_p6, %p1493_p7 }
 0x287   : > { %1503 = shalt.err (!%p1500_p13)
}
 0x288   : > { %1130 = dma.vmem_to_hbm [thread:$0]  (%p2162_p5), %s2000_s18, 64, %s1998_s2, %s2037_s12  }
 0x289   : > { %s1504_s17 = scalar_lea.vmem %s2008_s27, 64  ;;  %s1621_s4 = smov [#allocation20]  }
 0x28a   : > { %p1505_p12 = scmp.ne.s32.totalorder %s2008_s27, %s1504_s17  ;;  %s1508_s5 = sshll.u32 %s1621_s4, 4  ;;  %s1509_s5 = int_to_ptr.vmem [resolvable:$false] %s1508_s5 }
 0x28b   : > { %s1510_s1 = scalar_lea.vmem %s1509_s5, 128  ;;  %p1511_p10 = scmp.lt.s32.totalorder %s2008_s27, %s1509_s5 }
 0x28c   : > { %p1506_p4 = pnand %p1505_p12, %p2162_p5  ;;  %p1512_p1 = scmp.lt.s32.totalorder %s1510_s1, %s1504_s17 }
 0x28e   : > { %p1507_p9 = pneg %p1506_p4  ;;  %p1513_p0 = por %p1512_p1, %p1511_p10 }
 0x290   : > { %p1514_p7 = pnand %p1513_p0, %p1507_p9 }
 0x292   : > { %1517 = shalt.err (!%p1514_p7)
}
 0x293   : > { %s1518_s2 = scalar_lea.hbm %s2006_s29, 64  ;;  %s1522_s20 = scalar_lea.hbm %s2161_s16, 128 }
 0x294   : > { %p1519_p2 = scmp.ne.s32.totalorder %s2006_s29, %s1518_s2  ;;  %p1523_p11 = scmp.lt.u32.totalorder %s2006_s29, %s2161_s16 }
 0x295   : > { %p1524_p6 = scmp.lt.u32.totalorder %s1522_s20, %s1518_s2  ;;  %p1526_p12 = scmp.lt.u32.totalorder %s1518_s2, %s2006_s29 }
 0x296   : > { %p1520_p8 = pnand %p1519_p2, %p2162_p5 }
 0x297   : > { %p1525_p13 = por %p1524_p6, %p1523_p11 }
 0x298   : > { %p1521_p3 = pneg %p1520_p8 }
 0x299   : > { %p1527_p4 = por %p1526_p12, %p1525_p13 }
 0x29b   : > { %p1528_p9 = pnand %p1527_p4, %p1521_p3 }
 0x29d   : > { %1531 = shalt.err (!%p1528_p9)
}
 0x29e   : > { %1131 = dma.vmem_to_hbm [thread:$0]  (%p2162_p5), %s2008_s27, 64, %s2006_s29, %s2037_s12  }
 0x29f PF: > { %s827_s15 = sand.u32 1, %s1582_s30   ;;  %p2165_p10 = scmp.ne.s32.totalorder %s2149_s28, 0 }
 0x2a0   : > { %p2166_p1 = scmp.ge.s32.totalorder %s1602_s14, 2  ;;  %s828_s19 = scalar_lea.sflag [#allocation7], %s827_s15 }
 0x2a2   : > { %p1159_p0 = pnand %p2166_p1, %p2165_p10 }
 0x2a4   : > { %1573 = dma.done.wait (!%p1159_p0), %s828_s19, 64  }
 0x2a5   : > { %1575 = vsyncadd (!%p1159_p0), %s828_s19, 4294967232  ;;  %s2167_s22 = sadd.s32 4294967294, %s1602_s14  }
 0x2a6   : > { %s836_s21 = sand.u32 1, %s2167_s22  }
 0x2a7   : > { %s837_s7 = scalar_lea.sflag [#allocation19], %s836_s21 }
 0x2a8   : > { %1577 = dma.done.wait (!%p1159_p0), %s837_s7, 128  }
 0x2a9   : > { %1579 = vsyncadd (!%p1159_p0), %s837_s7, 4294967168  ;;  %s32_s14 = sadd.s32 1, %s1602_s14   ;;  %s2168_s30 = smov %s1586_s10 }
 0x2aa   : > { %p29_p5 = scmp.ge.s32.totalorder %s32_s14, 4   ;;  %s2169_s10 = smov %s1590_s11 }
 0x2ab   : > { %s2170_s11 = smov %s1891_s26  ;;  %s2171_s12 = smov %s1598_s13 }
 0x2ac   : > { %s2172_s13 = smov %s2174_s25  ;;  %31 = sbr.rel (!%p29_p5) target bundleno = 21 (0x15), region = 160 }
 0x2b3   :  { %851 = vsyncpa [#allocation6], 1 }
 0x2b4   :  { %853 = vsyncpa [#allocation6 + $0x1], 1 }
 0x2b5   :  { %854 = vsyncpa [#allocation9], 1 }
 0x2b6   :  { %855 = vsyncpa [#allocation12], 1 }
 0x2b7   :  { %856 = vsyncpa [#allocation15], 1 }
 0x2b8   :  { %857 = vsyncpa [#allocation7], 1 }
 0x2b9   :  { %859 = vsyncpa [#allocation7 + $0x1], 1 }
 0x2ba   :  { %860 = vsyncpa [#allocation19], 1 }
 0x2bb   :  { %862 = vsyncpa [#allocation19 + $0x1], 1 }

</bundles_post_ra>
